<compile_context>
chip_gen: v5e
topology: v5e:2x2
jax: 0.10.0
libtpu: 0.0.40
codegen_flags: <defaults>
</compile_context>

<pallas_src>
import jax
import jax.numpy as jnp
from jax.experimental import pallas as pl
from jax.experimental.pallas import tpu as pltpu


LANE = 128


def _round_up(x, m):
    return ((x + m - 1) // m) * m


def lstm_cell_kernel(x_ref, h_ref, c_ref, wx_ref, wh_ref, b_ref,
                     h_out_ref, c_out_ref):
    Hp = c_ref.shape[-1]  # lane-padded hidden size (multiple of 128)

    # Two wide MXU matmuls over the packed (K, 4*Hp) weights, f32 accumulation.
    pre = (
        jnp.dot(x_ref[...], wx_ref[...], preferred_element_type=jnp.float32)
        + jnp.dot(h_ref[...], wh_ref[...], preferred_element_type=jnp.float32)
        + b_ref[...].astype(jnp.float32)
    )

    # Gate order in the packed slab: [i, f, o, g]; slices are 128-lane aligned.
    i = jax.nn.sigmoid(pre[:, 0 * Hp:1 * Hp])
    f = jax.nn.sigmoid(pre[:, 1 * Hp:2 * Hp])
    o = jax.nn.sigmoid(pre[:, 2 * Hp:3 * Hp])
    g = jnp.tanh(pre[:, 3 * Hp:4 * Hp])

    c = c_ref[...].astype(jnp.float32)
    c_new = f * c + i * g
    h_new = o * jnp.tanh(c_new)

    h_out_ref[...] = h_new.astype(h_out_ref.dtype)
    c_out_ref[...] = c_new.astype(c_out_ref.dtype)


def lstm_cell(x, h, c, packed):
    """Pallas LSTM cell step. Returns (h_new, c_new, h_new) like the torch module."""
    batch, input_dim = x.shape
    H, Hp = packed["H"], packed["Hp"]
    wx, wh, b = packed["wx"], packed["wh"], packed["b"]  # (K,4Hp),(Hp,4Hp),(1,4Hp)
    h_dtype = h.dtype
    c_dtype = c.dtype

    # Lane-pad the state to Hp columns (zeros stay exactly zero through the cell
    # math because the matching Wh rows / Wx+bias columns are zero).
    if Hp != H:
        h = jnp.pad(h, ((0, 0), (0, Hp - H)))
        c = jnp.pad(c, ((0, 0), (0, Hp - H)))

    # Batch tile: multiple of the dtype's sublane packing, up to 512.
    itemsize = jnp.dtype(x.dtype).itemsize
    sublane = max(8, 32 // itemsize)          # 8 f32, 16 bf16, 32 int8/fp8
    bm = min(512, _round_up(batch, sublane))
    grid = (pl.cdiv(batch, bm),)              # ragged last block handled by Pallas

    # VMEM budget: double-buffered weights + activation tiles + f32 gate scratch.
    weight_bytes = wx.nbytes + wh.nbytes + b.nbytes
    act_tile_bytes = bm * (input_dim + 3 * Hp) * itemsize \
        + bm * Hp * jnp.dtype(c_dtype).itemsize
    gate_scratch = 3 * bm * 4 * Hp * 4        # pre + temporaries (rough bound)
    needed = 2 * weight_bytes + 2 * act_tile_bytes + gate_scratch
    vmem_limit = int(min(max(2 * needed, 32 * 2 ** 20), 64 * 2 ** 20))

    # Megacore: only shard the batch axis when activation traffic dominates the
    # packed weights (otherwise both cores would re-read the weights from HBM).
    act_bytes = batch * (input_dim + 4 * Hp) * itemsize
    semantics = ("parallel",) if (grid[0] > 1 and act_bytes >= weight_bytes) \
        else ("arbitrary",)

    h_new, c_new = pl.pallas_call(
        lstm_cell_kernel,
        out_shape=(
            jax.ShapeDtypeStruct((batch, Hp), h_dtype),
            jax.ShapeDtypeStruct((batch, Hp), c_dtype),
        ),
        grid=grid,
        in_specs=[
            pl.BlockSpec((bm, input_dim), lambda i: (i, 0)),      # x tile
            pl.BlockSpec((bm, Hp), lambda i: (i, 0)),             # h tile
            pl.BlockSpec((bm, Hp), lambda i: (i, 0)),             # c tile
            pl.BlockSpec((input_dim, 4 * Hp), lambda i: (0, 0)),  # packed Wx (resident)
            pl.BlockSpec((Hp, 4 * Hp), lambda i: (0, 0)),         # packed Wh (resident)
            pl.BlockSpec((1, 4 * Hp), lambda i: (0, 0)),          # packed bias (resident)
        ],
        out_specs=(
            pl.BlockSpec((bm, Hp), lambda i: (i, 0)),
            pl.BlockSpec((bm, Hp), lambda i: (i, 0)),
        ),
        compiler_params=pltpu.CompilerParams(
            dimension_semantics=semantics,
            vmem_limit_bytes=vmem_limit,
        ),
    )(x, h, c, wx, wh, b)

    if Hp != H:
        h_new = h_new[:, :H]
        c_new = c_new[:, :H]
    return h_new, c_new, h_new


def init_params(key, input_dim, output_dim, dtype=jnp.float32):
    """Per-gate params mirroring nn.Linear's U(-1/sqrt(fan_in), 1/sqrt(fan_in))."""
    keys = jax.random.split(key, 16)
    p = {}

    def lin(kw, kb, fan_in, fan_out):
        bound = 1.0 / jnp.sqrt(fan_in)
        w = jax.random.uniform(kw, (fan_in, fan_out), dtype, -bound, bound)
        b = jax.random.uniform(kb, (1, fan_out), dtype, -bound, bound)
        return w, b

    # x-side linears: input_dim -> output_dim
    p["wix"], p["bix"] = lin(keys[0], keys[1], input_dim, output_dim)
    p["wfx"], p["bfx"] = lin(keys[2], keys[3], input_dim, output_dim)
    p["wox"], p["box"] = lin(keys[4], keys[5], input_dim, output_dim)
    p["wgx"], p["bgx"] = lin(keys[6], keys[7], input_dim, output_dim)
    # h-side linears: output_dim -> output_dim
    p["wih"], p["bih"] = lin(keys[8], keys[9], output_dim, output_dim)
    p["wfh"], p["bfh"] = lin(keys[10], keys[11], output_dim, output_dim)
    p["woh"], p["boh"] = lin(keys[12], keys[13], output_dim, output_dim)
    p["wgh"], p["bgh"] = lin(keys[14], keys[15], output_dim, output_dim)
    return p


def pack_params(p, weight_dtype=None):
    """Pack per-gate weights into two wide matrices + one bias row ([i,f,o,g]),
    lane-padding every gate block to Hp = round_up(H, 128).  Pass
    weight_dtype=jnp.bfloat16 to halve weight HBM/VMEM bytes (f32 accumulation
    is preserved inside the kernel)."""
    H = p["wih"].shape[0]
    Hp = _round_up(H, LANE)

    def pad_cols(a):                      # (K, H) -> (K, Hp), zero pad columns
        return a if Hp == H else jnp.pad(a, ((0, 0), (0, Hp - H)))

    def pad_rows_cols(a):                 # (H, H) -> (Hp, Hp)
        return a if Hp == H else jnp.pad(a, ((0, Hp - H), (0, Hp - H)))

    wx = jnp.concatenate(
        [pad_cols(p["wix"]), pad_cols(p["wfx"]),
         pad_cols(p["wox"]), pad_cols(p["wgx"])], axis=1)
    wh = jnp.concatenate(
        [pad_rows_cols(p["wih"]), pad_rows_cols(p["wfh"]),
         pad_rows_cols(p["woh"]), pad_rows_cols(p["wgh"])], axis=1)
    b = jnp.concatenate(
        [pad_cols(p["bix"] + p["bih"]), pad_cols(p["bfx"] + p["bfh"]),
         pad_cols(p["box"] + p["boh"]), pad_cols(p["bgx"] + p["bgh"])], axis=1)

    if weight_dtype is not None:
        wx, wh, b = wx.astype(weight_dtype), wh.astype(weight_dtype), b.astype(weight_dtype)
    return {"wx": wx, "wh": wh, "b": b, "H": H, "Hp": Hp}


def lstm_cell_ref(x, h, c, p):
    """Pure-JAX reference mirroring the torch module gate-by-gate."""
    i = jax.nn.sigmoid(x @ p["wix"] + p["bix"] + h @ p["wih"] + p["bih"])
    f = jax.nn.sigmoid(x @ p["wfx"] + p["bfx"] + h @ p["wfh"] + p["bfh"])
    o = jax.nn.sigmoid(x @ p["wox"] + p["box"] + h @ p["woh"] + p["boh"])
    g = jnp.tanh(x @ p["wgx"] + p["bgx"] + h @ p["wgh"] + p["bgh"])
    c_new = f * c + i * g
    h_new = o * jnp.tanh(c_new)
    return h_new, c_new, h_new


if __name__ == "__main__":
    batch, input_dim, output_dim = 8, 16, 32
    key = jax.random.PRNGKey(0)
    k_x, k_h, k_c, k_p = jax.random.split(key, 4)

    x = jax.random.normal(k_x, (batch, input_dim), jnp.float32)
    h = jax.random.normal(k_h, (batch, output_dim), jnp.float32)
    c = jax.random.normal(k_c, (batch, output_dim), jnp.float32)
    params = init_params(k_p, input_dim, output_dim)
    packed = pack_params(params)

    h_ref, c_ref, _ = lstm_cell_ref(x, h, c, params)

    h_new, c_new, h_out = lstm_cell(x, h, c, packed)
    jax.block_until_ready((h_new, c_new, h_out))

    assert h_new.shape == (batch, output_dim) and c_new.shape == (batch, output_dim)
    assert jnp.allclose(h_new, h_ref, atol=1e-5, rtol=1e-5)
    assert jnp.allclose(c_new, c_ref, atol=1e-5, rtol=1e-5)
    assert jnp.allclose(h_out, h_ref, atol=1e-5, rtol=1e-5)

    print("KERNEL_OK")
</pallas_src>

<mosaic_0001>
module attributes {stable_mosaic.version = 11 : i64} {
  func.func @lstm_cell_kernel(%arg0: i32, %arg1: memref<8x16xf32, #tpu.memory_space<vmem>>, %arg2: memref<8x128xf32, #tpu.memory_space<vmem>>, %arg3: memref<8x128xf32, #tpu.memory_space<vmem>>, %arg4: memref<16x512xf32, #tpu.memory_space<vmem>>, %arg5: memref<128x512xf32, #tpu.memory_space<vmem>>, %arg6: memref<1x512xf32, #tpu.memory_space<vmem>>, %arg7: memref<8x128xf32, #tpu.memory_space<vmem>>, %arg8: memref<8x128xf32, #tpu.memory_space<vmem>>) attributes {dimension_semantics = [#tpu.dimension_semantics<arbitrary>], iteration_bounds = array<i64: 1>, scalar_prefetch = 0 : i64, scratch_operands = 0 : i64, tpu.core_type = #tpu.core_type<tc>, window_params = [{transform_indices = @transform_0, window_bounds = array<i64: 8, 16>}, {transform_indices = @transform_1, window_bounds = array<i64: 8, 128>}, {transform_indices = @transform_2, window_bounds = array<i64: 8, 128>}, {pipeline_mode = #tpu.pipeline_mode<synchronous>, transform_indices = @transform_3, window_bounds = array<i64: 16, 512>}, {pipeline_mode = #tpu.pipeline_mode<synchronous>, transform_indices = @transform_4, window_bounds = array<i64: 128, 512>}, {pipeline_mode = #tpu.pipeline_mode<synchronous>, transform_indices = @transform_5, window_bounds = array<i64: 1, 512>}, {transform_indices = @transform_6, window_bounds = array<i64: 8, 128>}, {transform_indices = @transform_7, window_bounds = array<i64: 8, 128>}]} {
    %c0 = arith.constant 0 : index
    %c0_0 = arith.constant 0 : index
    %0 = vector.load %arg1[%c0, %c0_0] : memref<8x16xf32, #tpu.memory_space<vmem>>, vector<8x16xf32>
    %c0_1 = arith.constant 0 : index
    %c0_2 = arith.constant 0 : index
    %1 = vector.load %arg4[%c0_1, %c0_2] : memref<16x512xf32, #tpu.memory_space<vmem>>, vector<16x512xf32>
    %cst = arith.constant dense<0.000000e+00> : vector<8x512xf32>
    %2 = tpu.matmul %0, %1, %cst {dimension_numbers = #tpu.dot_dimension_numbers<[1], [0], [0], [1], [0, 0, 1, 1], [], []>} : vector<8x16xf32>, vector<16x512xf32>, vector<8x512xf32> -> vector<8x512xf32>
    %c0_3 = arith.constant 0 : index
    %c0_4 = arith.constant 0 : index
    %3 = vector.load %arg2[%c0_3, %c0_4] : memref<8x128xf32, #tpu.memory_space<vmem>>, vector<8x128xf32>
    %c0_5 = arith.constant 0 : index
    %c0_6 = arith.constant 0 : index
    %4 = vector.load %arg5[%c0_5, %c0_6] : memref<128x512xf32, #tpu.memory_space<vmem>>, vector<128x512xf32>
    %cst_7 = arith.constant dense<0.000000e+00> : vector<8x512xf32>
    %5 = tpu.matmul %3, %4, %cst_7 {dimension_numbers = #tpu.dot_dimension_numbers<[1], [0], [0], [1], [0, 0, 1, 1], [], []>} : vector<8x128xf32>, vector<128x512xf32>, vector<8x512xf32> -> vector<8x512xf32>
    %6 = arith.addf %2, %5 : vector<8x512xf32>
    %c0_8 = arith.constant 0 : index
    %c0_9 = arith.constant 0 : index
    %7 = vector.load %arg6[%c0_8, %c0_9] : memref<1x512xf32, #tpu.memory_space<vmem>>, vector<1x512xf32>
    %8 = vector.broadcast %7 : vector<1x512xf32> to vector<8x512xf32>
    %9 = arith.addf %6, %8 : vector<8x512xf32>
    %10 = vector.extract_strided_slice %9 {offsets = [0, 0], sizes = [8, 128], strides = [1, 1]} : vector<8x512xf32> to vector<8x128xf32>
    %11 = arith.negf %10 : vector<8x128xf32>
    %12 = math.exp %11 : vector<8x128xf32>
    %cst_10 = arith.constant 1.000000e+00 : f32
    %13 = vector.broadcast %cst_10 : f32 to vector<8x128xf32>
    %14 = arith.addf %13, %12 : vector<8x128xf32>
    %15 = arith.divf %13, %14 : vector<8x128xf32>
    %16 = vector.extract_strided_slice %9 {offsets = [0, 128], sizes = [8, 128], strides = [1, 1]} : vector<8x512xf32> to vector<8x128xf32>
    %17 = arith.negf %16 : vector<8x128xf32>
    %18 = math.exp %17 : vector<8x128xf32>
    %cst_11 = arith.constant 1.000000e+00 : f32
    %19 = vector.broadcast %cst_11 : f32 to vector<8x128xf32>
    %20 = arith.addf %19, %18 : vector<8x128xf32>
    %21 = arith.divf %19, %20 : vector<8x128xf32>
    %22 = vector.extract_strided_slice %9 {offsets = [0, 256], sizes = [8, 128], strides = [1, 1]} : vector<8x512xf32> to vector<8x128xf32>
    %23 = arith.negf %22 : vector<8x128xf32>
    %24 = math.exp %23 : vector<8x128xf32>
    %cst_12 = arith.constant 1.000000e+00 : f32
    %25 = vector.broadcast %cst_12 : f32 to vector<8x128xf32>
    %26 = arith.addf %25, %24 : vector<8x128xf32>
    %27 = arith.divf %25, %26 : vector<8x128xf32>
    %28 = vector.extract_strided_slice %9 {offsets = [0, 384], sizes = [8, 128], strides = [1, 1]} : vector<8x512xf32> to vector<8x128xf32>
    %29 = math.tanh %28 : vector<8x128xf32>
    %c0_13 = arith.constant 0 : index
    %c0_14 = arith.constant 0 : index
    %30 = vector.load %arg3[%c0_13, %c0_14] : memref<8x128xf32, #tpu.memory_space<vmem>>, vector<8x128xf32>
    %31 = arith.mulf %21, %30 : vector<8x128xf32>
    %32 = arith.mulf %15, %29 : vector<8x128xf32>
    %33 = arith.addf %31, %32 : vector<8x128xf32>
    %34 = math.tanh %33 : vector<8x128xf32>
    %35 = arith.mulf %27, %34 : vector<8x128xf32>
    %c0_15 = arith.constant 0 : index
    %c0_16 = arith.constant 0 : index
    %36 = vector.load %arg7[%c0_15, %c0_16] : memref<8x128xf32, #tpu.memory_space<vmem>>, vector<8x128xf32>
    tpu.vector_store %arg7[%c0_15, %c0_16], %35 {strides = array<i32>} : memref<8x128xf32, #tpu.memory_space<vmem>>, vector<8x128xf32>,
    %c0_17 = arith.constant 0 : index
    %c0_18 = arith.constant 0 : index
    %37 = vector.load %arg8[%c0_17, %c0_18] : memref<8x128xf32, #tpu.memory_space<vmem>>, vector<8x128xf32>
    tpu.vector_store %arg8[%c0_17, %c0_18], %33 {strides = array<i32>} : memref<8x128xf32, #tpu.memory_space<vmem>>, vector<8x128xf32>,
    return
  }
  func.func @transform_0(%arg0: i32) -> (i32, i32) {
    %c0_i32 = arith.constant 0 : i32
    %c0_i32_0 = arith.constant 0 : i32
    return %arg0, %c0_i32 : i32, i32
  }
  func.func @transform_1(%arg0: i32) -> (i32, i32) {
    %c0_i32 = arith.constant 0 : i32
    %c0_i32_0 = arith.constant 0 : i32
    return %arg0, %c0_i32 : i32, i32
  }
  func.func @transform_2(%arg0: i32) -> (i32, i32) {
    %c0_i32 = arith.constant 0 : i32
    %c0_i32_0 = arith.constant 0 : i32
    return %arg0, %c0_i32 : i32, i32
  }
  func.func @transform_3(%arg0: i32) -> (i32, i32) {
    %c0_i32 = arith.constant 0 : i32
    %c0_i32_0 = arith.constant 0 : i32
    %c0_i32_1 = arith.constant 0 : i32
    return %c0_i32, %c0_i32_0 : i32, i32
  }
  func.func @transform_4(%arg0: i32) -> (i32, i32) {
    %c0_i32 = arith.constant 0 : i32
    %c0_i32_0 = arith.constant 0 : i32
    %c0_i32_1 = arith.constant 0 : i32
    return %c0_i32, %c0_i32_0 : i32, i32
  }
  func.func @transform_5(%arg0: i32) -> (i32, i32) {
    %c0_i32 = arith.constant 0 : i32
    %c0_i32_0 = arith.constant 0 : i32
    %c0_i32_1 = arith.constant 0 : i32
    return %c0_i32, %c0_i32_0 : i32, i32
  }
  func.func @transform_6(%arg0: i32) -> (i32, i32) {
    %c0_i32 = arith.constant 0 : i32
    %c0_i32_0 = arith.constant 0 : i32
    return %arg0, %c0_i32 : i32, i32
  }
  func.func @transform_7(%arg0: i32) -> (i32, i32) {
    %c0_i32 = arith.constant 0 : i32
    %c0_i32_0 = arith.constant 0 : i32
    return %arg0, %c0_i32 : i32, i32
  }
}

</mosaic_0001>

<bundles_post_ra>
// kernel: tpu_custom_call.1
= control target key start
LH: loop header
LB: loop body
LE: loop exit
PB: predicated region body
PF: predicated region fallthrough
CT: control target
= control target key end

     0   :  { %13 = vsyncpa [#allocation3], 0  ;;  %s735_s0 = inlined_call_operand.hbm [shape: f32[8,16], index: 0, kind: input, shape index: {}]   ;;  %s736_s1 = inlined_call_operand.hbm [shape: f32[8,128], index: 1, kind: input, shape index: {}]   ;;  %s737_s2 = inlined_call_operand.hbm [shape: f32[8,128], index: 2, kind: input, shape index: {}]   ;;  %s738_s3 = inlined_call_operand.hbm [shape: f32[16,512], index: 3, kind: input, shape index: {}]   ;;  %s739_s4 = inlined_call_operand.hbm [shape: f32[128,512], index: 4, kind: input, shape index: {}]   ;;  %s740_s5 = inlined_call_operand.vmem [shape: f32[1,512], index: 5, kind: input, shape index: {}]   ;;  %s741_s6 = inlined_call_operand.hbm [shape: f32[8,128], index: 6, kind: output, shape index: {0}]   ;;  %s742_s7 = inlined_call_operand.hbm [shape: f32[8,128], index: 7, kind: output, shape index: {1}]  }
   0x1   :  { %14 = vsyncpa [#allocation6], 0 }
   0x2   :  { %15 = vsyncpa [#allocation9], 0 }
   0x3   :  { %16 = vsyncpa [#allocation4], 0  ;;  %s34_s26 = sshll.u32 %s736_s1, 4  ;;  %s35_s26 = int_to_ptr.hbm [resolvable:$true] %s34_s26 }
   0x4   :  { %17 = vsyncpa [#allocation13], 0  ;;  %s662_s27 = smov [#allocation5]   ;;  %s55_s8 = sshll.u32 %s738_s3, 4  ;;  %s56_s8 = int_to_ptr.hbm [resolvable:$true] %s55_s8 }
   0x5   :  { %s36_s28 = sshll.u32 %s662_s27, 4  ;;  %s663_s9 = smov [#allocation8]   ;;  %s37_s28 = int_to_ptr.vmem [resolvable:$true] %s36_s28 }
   0x6   :  { %39 = dma.hbm_to_vmem [thread:$0]  %s35_s26, 128, %s37_s28, [#allocation6]  }
   0x7   :  { %s57_s10 = sshll.u32 %s663_s9, 4  ;;  %s664_s11 = smov 512   ;;  %s58_s10 = int_to_ptr.vmem [resolvable:$true] %s57_s10 }
   0x8   :  { %s665_s12 = smov 32   ;;  %s23_s1 = sshll.u32 %s735_s0, 4  ;;  %s24_s1 = int_to_ptr.hbm [resolvable:$true] %s23_s1 }
   0x9   :  { %63 = dma.hbm_to_vmem [thread:$0]  %s56_s8, 1024, %s58_s10, [#allocation9], %s664_s11, %s664_s11, %s665_s12  }
   0xa   :  { %s666_s15 = smov [#allocation2]   ;;  %s45_s3 = sshll.u32 %s737_s2, 4  ;;  %s46_s3 = int_to_ptr.hbm [resolvable:$true] %s45_s3 }
   0xb   :  { %s25_s16 = sshll.u32 %s666_s15, 4  ;;  %s667_s19 = smov [#allocation7]   ;;  %s26_s16 = int_to_ptr.vmem [resolvable:$true] %s25_s16 }
   0xc   :  { %28 = dma.hbm_to_vmem [thread:$0]  %s24_s1, 128, %s26_s16, [#allocation3]  }
   0xd   :  { %s47_s20 = sshll.u32 %s667_s19, 4  ;;  %s68_s23 = sshll.u32 %s739_s4, 4  ;;  %s48_s20 = int_to_ptr.vmem [resolvable:$true] %s47_s20  ;;  %s69_s23 = int_to_ptr.hbm [resolvable:$true] %s68_s23 }
   0xe   :  { %50 = dma.hbm_to_vmem [thread:$0]  %s46_s3, 128, %s48_s20, [#allocation6]  }
   0xf   :  { %s668_s0 = smov [#allocation10]  }
  0x10   :  { %s70_s24 = sshll.u32 %s668_s0, 4  ;;  %s71_s24 = int_to_ptr.vmem [resolvable:$true] %s70_s24 }
  0x11   :  { %76 = dma.hbm_to_vmem [thread:$0]  %s69_s23, 8192, %s71_s24, [#allocation9], %s664_s11, %s664_s11, %s665_s12  }
  0x12   :  { %652 = dma.done.wait [#allocation3], 128  }
  0x13   :  { %653 = vsyncadd [#allocation3], 4294967168 }
  0x14   :  { %654 = dma.done.wait [#allocation6], 256  }
  0x15   :  { %655 = vsyncadd [#allocation6], 4294967040 }
  0x16   :  { %656 = dma.done.wait [#allocation9], 9216  }
  0x17   :  { %657 = vsyncadd [#allocation9], 4294958080  ;;  %v169_v0 = vld [vmem:[#allocation10 + $0x1e0] sm:$0xff]  ;;  %v170_v1 = vld [vmem:[#allocation10 + $0x1e8] sm:$0xff]  ;;  %vm253_vm0 = vcmask 130048   ;;  %s435_s28 = sshll.u32 %s742_s7, 4  ;;  %s436_s28 = int_to_ptr.hbm [resolvable:$true] %s435_s28 }
  0x18   :  { %v171_v2 = vld [vmem:[#allocation10 + $0x1f0] sm:$0xff]  ;;  %173 = vmatpush.msra.mxu0 %v169_v0  ;;  %193 = vmatpush.msra.mxu1 %v170_v1  ;;  %v165_v3 = vld [vmem:[#allocation10 + $0x1c0] sm:$0xff]  ;;  %v166_v4 = vld [vmem:[#allocation10 + $0x1c8] sm:$0xff]  ;;  %s670_s29 = smov [#allocation11]   ;;  %s424_s9 = sshll.u32 %s741_s6, 4  ;;  %s425_s9 = int_to_ptr.hbm [resolvable:$true] %s424_s9 }
  0x19   :  { %v167_v5 = vld [vmem:[#allocation10 + $0x1d0] sm:$0xff]  ;;  %213 = vmatpush.msra.mxu2 %v171_v2  ;;  %v161_v6 = vld [vmem:[#allocation10 + $0x1a0] sm:$0xff]  ;;  %v162_v7 = vld [vmem:[#allocation10 + $0x1a8] sm:$0xff]  ;;  %s422_s30 = sshll.u32 %s670_s29, 4  ;;  %s423_s30 = int_to_ptr.vmem [resolvable:$true] %s422_s30 }
  0x1a   :  { %174 = vmatpush.msra.mxu0 %v165_v3  ;;  %194 = vmatpush.msra.mxu1 %v166_v4  ;;  %v163_v8 = vld [vmem:[#allocation10 + $0x1b0] sm:$0xff]  ;;  %v157_v9 = vld [vmem:[#allocation10 + $0x180] sm:$0xff]  ;;  %v158_v10 = vld [vmem:[#allocation10 + $0x188] sm:$0xff] }
  0x1b   :  { %214 = vmatpush.msra.mxu2 %v167_v5  ;;  %v172_v11 = vld [vmem:[#allocation10 + $0x1f8] sm:$0xff]  ;;  %v159_v12 = vld [vmem:[#allocation10 + $0x190] sm:$0xff]  ;;  %v153_v14 = vld [vmem:[#allocation10 + $0x160] sm:$0xff] }
  0x1c   :  { %175 = vmatpush.msra.mxu0 %v161_v6  ;;  %195 = vmatpush.msra.mxu1 %v162_v7  ;;  %v168_v13 = vld [vmem:[#allocation10 + $0x1d8] sm:$0xff]  ;;  %v154_v15 = vld [vmem:[#allocation10 + $0x168] sm:$0xff]  ;;  %v155_v16 = vld [vmem:[#allocation10 + $0x170] sm:$0xff] }
  0x1d   :  { %215 = vmatpush.msra.mxu2 %v163_v8  ;;  %233 = vmatpush.msra.mxu3 %v172_v11  ;;  %v164_v17 = vld [vmem:[#allocation10 + $0x1b8] sm:$0xff]  ;;  %v149_v18 = vld [vmem:[#allocation10 + $0x140] sm:$0xff]  ;;  %v150_v19 = vld [vmem:[#allocation10 + $0x148] sm:$0xff] }
  0x1e   :  { %176 = vmatpush.msra.mxu0 %v157_v9  ;;  %196 = vmatpush.msra.mxu1 %v158_v10  ;;  %v151_v20 = vld [vmem:[#allocation10 + $0x150] sm:$0xff]  ;;  %v160_v21 = vld [vmem:[#allocation10 + $0x198] sm:$0xff]  ;;  %v145_v22 = vld [vmem:[#allocation10 + $0x120] sm:$0xff] }
  0x1f   :  { %216 = vmatpush.msra.mxu2 %v159_v12  ;;  %234 = vmatpush.msra.mxu3 %v168_v13  ;;  %v146_v23 = vld [vmem:[#allocation10 + $0x128] sm:$0xff]  ;;  %v147_v24 = vld [vmem:[#allocation10 + $0x130] sm:$0xff]  ;;  %v156_v25 = vld [vmem:[#allocation10 + $0x178] sm:$0xff] }
  0x20   :  { %177 = vmatpush.msra.mxu0 %v153_v14  ;;  %197 = vmatpush.msra.mxu1 %v154_v15  ;;  %v141_v26 = vld [vmem:[#allocation10 + $0x100] sm:$0xff]  ;;  %v142_v27 = vld [vmem:[#allocation10 + $0x108] sm:$0xff]  ;;  %v143_v28 = vld [vmem:[#allocation10 + $0x110] sm:$0xff] }
  0x21   :  { %217 = vmatpush.msra.mxu2 %v155_v16  ;;  %235 = vmatpush.msra.mxu3 %v164_v17  ;;  %v152_v29 = vld [vmem:[#allocation10 + $0x158] sm:$0xff]  ;;  %v137_v30 = vld [vmem:[#allocation10 + $0xe0] sm:$0xff]  ;;  %v138_v31 = vld [vmem:[#allocation10 + $0xe8] sm:$0xff] }
  0x22   :  { %178 = vmatpush.msra.mxu0 %v149_v18  ;;  %198 = vmatpush.msra.mxu1 %v150_v19  ;;  %v139_v32 = vld [vmem:[#allocation10 + $0xf0] sm:$0xff]  ;;  %v148_v33 = vld [vmem:[#allocation10 + $0x138] sm:$0xff]  ;;  %v133_v34 = vld [vmem:[#allocation10 + $0xc0] sm:$0xff] }
  0x23   :  { %218 = vmatpush.msra.mxu2 %v151_v20  ;;  %236 = vmatpush.msra.mxu3 %v160_v21  ;;  %v134_v35 = vld [vmem:[#allocation10 + $0xc8] sm:$0xff]  ;;  %v135_v36 = vld [vmem:[#allocation10 + $0xd0] sm:$0xff]  ;;  %v144_v37 = vld [vmem:[#allocation10 + $0x118] sm:$0xff] }
  0x24   :  { %179 = vmatpush.msra.mxu0 %v145_v22  ;;  %199 = vmatpush.msra.mxu1 %v146_v23  ;;  %v129_v38 = vld [vmem:[#allocation10 + $0xa0] sm:$0xff]  ;;  %v130_v39 = vld [vmem:[#allocation10 + $0xa8] sm:$0xff]  ;;  %v131_v40 = vld [vmem:[#allocation10 + $0xb0] sm:$0xff] }
  0x25   :  { %219 = vmatpush.msra.mxu2 %v147_v24  ;;  %237 = vmatpush.msra.mxu3 %v156_v25  ;;  %v140_v41 = vld [vmem:[#allocation10 + $0xf8] sm:$0xff]  ;;  %v125_v42 = vld [vmem:[#allocation10 + $0x80] sm:$0xff]  ;;  %v126_v43 = vld [vmem:[#allocation10 + $0x88] sm:$0xff] }
  0x26   :  { %180 = vmatpush.msra.mxu0 %v141_v26  ;;  %200 = vmatpush.msra.mxu1 %v142_v27  ;;  %v127_v44 = vld [vmem:[#allocation10 + $0x90] sm:$0xff]  ;;  %v136_v45 = vld [vmem:[#allocation10 + $0xd8] sm:$0xff]  ;;  %v121_v46 = vld [vmem:[#allocation10 + $0x60] sm:$0xff] }
  0x27   :  { %220 = vmatpush.msra.mxu2 %v143_v28  ;;  %238 = vmatpush.msra.mxu3 %v152_v29  ;;  %v122_v47 = vld [vmem:[#allocation10 + $0x68] sm:$0xff]  ;;  %v123_v48 = vld [vmem:[#allocation10 + $0x70] sm:$0xff]  ;;  %v132_v49 = vld [vmem:[#allocation10 + $0xb8] sm:$0xff] }
  0x28   :  { %181 = vmatpush.msra.mxu0 %v137_v30  ;;  %201 = vmatpush.msra.mxu1 %v138_v31  ;;  %v117_v50 = vld [vmem:[#allocation10 + $0x40] sm:$0xff]  ;;  %v118_v51 = vld [vmem:[#allocation10 + $0x48] sm:$0xff]  ;;  %v119_v52 = vld [vmem:[#allocation10 + $0x50] sm:$0xff] }
  0x29   :  { %221 = vmatpush.msra.mxu2 %v139_v32  ;;  %239 = vmatpush.msra.mxu3 %v148_v33  ;;  %v128_v53 = vld [vmem:[#allocation10 + $0x98] sm:$0xff]  ;;  %v113_v54 = vld [vmem:[#allocation10 + $0x20] sm:$0xff]  ;;  %v114_v55 = vld [vmem:[#allocation10 + $0x28] sm:$0xff] }
  0x2a   :  { %182 = vmatpush.msra.mxu0 %v133_v34  ;;  %202 = vmatpush.msra.mxu1 %v134_v35  ;;  %v115_v56 = vld [vmem:[#allocation10 + $0x30] sm:$0xff]  ;;  %v124_v57 = vld [vmem:[#allocation10 + $0x78] sm:$0xff]  ;;  %v109_v58 = vld [vmem:[#allocation10] sm:$0xff] }
  0x2b   :  { %222 = vmatpush.msra.mxu2 %v135_v36  ;;  %240 = vmatpush.msra.mxu3 %v144_v37  ;;  %v110_v59 = vld [vmem:[#allocation10 + $0x8] sm:$0xff]  ;;  %v111_v60 = vld [vmem:[#allocation10 + $0x10] sm:$0xff]  ;;  %v104_v62 = vld [vmem:[#allocation8 + $0x20] sm:$0xff] }
  0x2c   :  { %183 = vmatpush.msra.mxu0 %v129_v38  ;;  %203 = vmatpush.msra.mxu1 %v130_v39  ;;  %v108_v61 = vld [vmem:[#allocation5] sm:$0xff]  ;;  %v105_v63 = vld [vmem:[#allocation8 + $0x28] sm:$0xff]  ;;  %v120_v0 = vld [vmem:[#allocation10 + $0x58] sm:$0xff] }
  0x2d   :  { %223 = vmatpush.msra.mxu2 %v131_v40  ;;  %241 = vmatpush.msra.mxu3 %v140_v41  ;;  %v106_v1 = vld [vmem:[#allocation8 + $0x30] sm:$0xff]  ;;  %v100_v2 = vld [vmem:[#allocation8] sm:$0xff]  ;;  %v101_v3 = vld [vmem:[#allocation8 + $0x8] sm:$0xff] }
  0x2e   :  { %184 = vmatpush.msra.mxu0 %v125_v42  ;;  %204 = vmatpush.msra.mxu1 %v126_v43  ;;  %v116_v4 = vld [vmem:[#allocation10 + $0x38] sm:$0xff]  ;;  %v102_v5 = vld [vmem:[#allocation8 + $0x10] sm:$0xff]  ;;  %v99_v7 = vld [vmem:[#allocation2] sm:$0xff] }
  0x2f   :  { %224 = vmatpush.msra.mxu2 %v127_v44  ;;  %242 = vmatpush.msra.mxu3 %v136_v45  ;;  %v112_v6 = vld [vmem:[#allocation10 + $0x18] sm:$0xff]  ;;  %v337_v12 = vld [vmem:[%s740_s5] sm:$0xf]  ;;  %s669_s5 = smov [#allocation12]  }
  0x30   :  { %185 = vmatpush.msra.mxu0 %v121_v46  ;;  %205 = vmatpush.msra.mxu1 %v122_v47  ;;  %v107_v8 = vld [vmem:[#allocation8 + $0x38] sm:$0xff]  ;;  %v339_v14 = vperm.slane %v337_v12, 0  ;;  %v340_v16 = vperm.slane %v337_v12, 1  ;;  %v341_v25 = vperm.slane %v337_v12, 2  ;;  %v342_v36 = vperm.slane %v337_v12, 3  ;;  %s433_s25 = sshll.u32 %s669_s5, 4  ;;  %s434_s25 = int_to_ptr.vmem [resolvable:$true] %s433_s25 }
  0x31   :  { %225 = vmatpush.msra.mxu2 %v123_v48  ;;  %243 = vmatpush.msra.mxu3 %v132_v49  ;;  %v103_v9 = vld [vmem:[#allocation8 + $0x18] sm:$0xff] }
  0x32   :  { %186 = vmatpush.msra.mxu0 %v117_v50  ;;  %206 = vmatpush.msra.mxu1 %v118_v51 }
  0x33   :  { %226 = vmatpush.msra.mxu2 %v119_v52  ;;  %244 = vmatpush.msra.mxu3 %v128_v53 }
  0x34   :  { %187 = vmatpush.msra.mxu0 %v113_v54  ;;  %207 = vmatpush.msra.mxu1 %v114_v55 }
  0x35   :  { %227 = vmatpush.msra.mxu2 %v115_v56  ;;  %245 = vmatpush.msra.mxu3 %v124_v57 }
  0x36   :  { %188 = vmatpush.msra.mxu0 %v109_v58  ;;  %208 = vmatpush.msra.mxu1 %v110_v59  ;;  %v409_v59 = vld [vmem:[#allocation7] sm:$0xff] }
  0x37   :  { %228 = vmatpush.msra.mxu2 %v111_v60  ;;  %189 = vmatmul.f32.vlgmr.msra.gmra.mxu0 %v108_v61 }
  0x38   :  { %209 = vmatmul.f32.vlgmr.msra.gmra.mxu1 %v108_v61  ;;  %229 = vmatmul.f32.vlgmr.msra.gmra.mxu2 %v108_v61 }
  0x39   :  { %271 = vmatpush.msrb.mxu0 %v104_v62  ;;  %291 = vmatpush.msrb.mxu1 %v105_v63 }
  0x3a   :  { %246 = vmatpush.msra.mxu3 %v120_v0  ;;  %311 = vmatpush.msrb.mxu2 %v106_v1 }
  0x3b   :  { %272 = vmatpush.msrb.mxu0 %v100_v2  ;;  %292 = vmatpush.msrb.mxu1 %v101_v3 }
  0x3c   :  { %247 = vmatpush.msra.mxu3 %v116_v4  ;;  %312 = vmatpush.msrb.mxu2 %v102_v5 }
  0x3e   :  { %248 = vmatpush.msra.mxu3 %v112_v6 }
  0x3f   :  { %249 = vmatmul.f32.vlgmr.msra.gmra.mxu3 %v108_v61  ;;  %452 = vmatmul.msk.f32.vlgmr.msrb.gmra.mxu0 %vm253_vm0, %v99_v7 }
  0x40   :  { %453 = vmatmul.msk.f32.vlgmr.msrb.gmra.mxu1 %vm253_vm0, %v99_v7  ;;  %454 = vmatmul.msk.f32.vlgmr.msrb.gmra.mxu2 %vm253_vm0, %v99_v7 }
  0x41   :  { %331 = vmatpush.msrb.mxu3 %v107_v8 }
  0x43   :  { %332 = vmatpush.msrb.mxu3 %v103_v9 }
  0x47   :  { %455 = vmatmul.msk.f32.vlgmr.msrb.gmra.mxu3 %vm253_vm0, %v99_v7 }
  0xb4   :  { %v190_v10 = vpop.f32.mrf.mxu0 }
  0xb5   :  { %v210_v11 = vpop.f32.mrf.mxu1 }
  0xbb   :  { %v230_v13 = vpop.f32.mrf.mxu2 }
  0xbc   :  { %v274_v15 = vpop.f32.mrf.mxu0 }
  0xbd   :  { %v275_v17 = vadd.f32 %v274_v15, %v190_v10  ;;  %v294_v18 = vpop.f32.mrf.mxu1 }
  0xbe   :  { %v295_v19 = vadd.f32 %v294_v18, %v210_v11 }
  0xbf   :  { %v347_v20 = vadd.f32 %v339_v14, %v275_v17 }
  0xc0   :  { %v348_v21 = vadd.f32 %v340_v16, %v295_v19 }
  0xc1   :  { %v456_v22 = vmul.f32 -1.442695, %v347_v20 }
  0xc2   :  { %v457_v23 = vmul.f32 -1.442695, %v348_v21  ;;  %v250_v24 = vpop.f32.mrf.mxu3 }
  0xc3   :  { %468 = vpow2.f32 %v456_v22  ;;  %v314_v26 = vpop.f32.mrf.mxu2 }
  0xc4   :  { %470 = vpow2.f32 %v457_v23  ;;  %v315_v27 = vadd.f32 %v314_v26, %v230_v13 }
  0xc6   :  { %v349_v28 = vadd.f32 %v341_v25, %v315_v27 }
  0xc8   :  { %v458_v29 = vmul.f32 -1.442695, %v349_v28 }
  0xc9   :  { %v469_v30 = vpop.eup %468 }
  0xca   :  { %v471_v31 = vpop.eup %470  ;;  %v354_v32 = vadd.f32 1.0, %v469_v30  ;;  %472 = vpow2.f32 %v458_v29  ;;  %v334_v34 = vpop.f32.mrf.mxu3 }
  0xcb   :  { %v373_v33 = vadd.f32 1.0, %v471_v31  ;;  %v335_v35 = vadd.f32 %v334_v34, %v250_v24 }
  0xcc   :  { %474 = vrcp.f32 %v354_v32  ;;  %v366_v46 = vand.u32 2147483648, %v354_v32  ;;  %v364_v49 = vand.u32 2147483647, %v354_v32  ;;  %vm360_vm3 = vweird.f32 %v354_v32 }
  0xcd   :  { %476 = vrcp.f32 %v373_v33  ;;  %v350_v40 = vadd.f32 %v342_v36, %v335_v35  ;;  %v385_v47 = vand.u32 2147483648, %v373_v33  ;;  %v383_v51 = vand.u32 2147483647, %v373_v33 }
  0xce   :  { %vm379_vm4 = vweird.f32 %v373_v33  ;;  %v367_v54 = vor.u32 1.1754944e-38, %v366_v46  ;;  %vm365_vm7 = vcmp.eq.f32.partialorder %v364_v49, 8.507059e+37 }
  0xcf   :  { %v386_v57 = vor.u32 1.1754944e-38, %v385_v47  ;;  %vm384_vm8 = vcmp.eq.f32.partialorder %v383_v51, 8.507059e+37 }
  0xd0   :  { %v473_v37 = vpop.eup %472 }
  0xd1   :  { %v392_v38 = vadd.f32 1.0, %v473_v37 }
  0xd2   :  { %v475_v39 = vpop.eup %474 }
  0xd3   :  { %v477_v41 = vpop.eup %476  ;;  %v356_v42 = vmul.f32 %v475_v39, %v354_v32  ;;  %478 = vrcp.f32 %v392_v38  ;;  %vm361_vm1 = vweird.f32 %v475_v39  ;;  %v404_v6 = vand.u32 2147483648, %v392_v38 }
  0xd4   :  { %v375_v43 = vmul.f32 %v477_v41, %v373_v33  ;;  %480 = vtanh.f32 %v350_v40  ;;  %vm380_vm2 = vweird.f32 %v477_v41  ;;  %vm362_vm5 = vmor %vm360_vm3, %vm361_vm1  ;;  %vm398_vm10 = vweird.f32 %v392_v38 }
  0xd5   :  { %v357_v44 = vsub.f32 1.0, %v356_v42  ;;  %vm381_vm6 = vmor %vm379_vm4, %vm380_vm2  ;;  %v402_v7 = vand.u32 2147483647, %v392_v38  ;;  %v405_v9 = vor.u32 1.1754944e-38, %v404_v6 }
  0xd6   :  { %v376_v45 = vsub.f32 1.0, %v375_v43 }
  0xd7   :  { %v358_v48 = vmul.f32 %v475_v39, %v357_v44  ;;  %vm403_vm12 = vcmp.eq.f32.partialorder %v402_v7, 8.507059e+37 }
  0xd8   :  { %v377_v50 = vmul.f32 %v477_v41, %v376_v45 }
  0xd9   :  { %v479_v52 = vpop.eup %478  ;;  %v359_v53 = vadd.f32 %v475_v39, %v358_v48 }
  0xda   :  { %v378_v55 = vadd.f32 %v477_v41, %v377_v50  ;;  %v394_v56 = vmul.f32 %v479_v52, %v392_v38  ;;  %v481_v60 = vpop.eup %480  ;;  %vm399_vm9 = vweird.f32 %v479_v52 }
  0xdb   :  { %v363_v58 = vsel %vm362_vm5, %v475_v39, %v359_v53  ;;  %vm400_vm11 = vmor %vm398_vm10, %vm399_vm9 }
  0xdc   :  { %v368_v61 = vsel %vm365_vm7, %v367_v54, %v363_v58  ;;  %v382_v62 = vsel %vm381_vm6, %v477_v41, %v378_v55  ;;  %v395_v63 = vsub.f32 1.0, %v394_v56 }
  0xdd   :  { %v387_v0 = vsel %vm384_vm8, %v386_v57, %v382_v62  ;;  %v411_v1 = vmul.f32 %v481_v60, %v368_v61 }
  0xde   :  { %v410_v2 = vmul.f32 %v409_v59, %v387_v0  ;;  %v396_v3 = vmul.f32 %v479_v52, %v395_v63 }
  0xe0   :  { %v412_v4 = vadd.f32 %v411_v1, %v410_v2  ;;  %v397_v5 = vadd.f32 %v479_v52, %v396_v3 }
  0xe2   :  { %416 = vst [vmem:[#allocation12] sm:$0xff] %v412_v4  ;;  %482 = vtanh.f32 %v412_v4  ;;  %v401_v8 = vsel %vm400_vm11, %v479_v52, %v397_v5 }
  0xe3   :  { %438 = dma.vmem_to_hbm [thread:$0]  %s434_s25, 128, %s436_s28, [#allocation13]   ;;  %v406_v11 = vsel %vm403_vm12, %v405_v9, %v401_v8 }
  0xe8   :  { %v483_v10 = vpop.eup %482 }
  0xe9   :  { %v414_v12 = vmul.f32 %v483_v10, %v406_v11 }
  0xeb   :  { %415 = vst [vmem:[#allocation11] sm:$0xff] %v414_v12 }
  0xec   :  { %427 = dma.vmem_to_hbm [thread:$0]  %s423_s30, 128, %s425_s9, [#allocation4]  }
  0xed   :  { %658 = dma.done.wait [#allocation4], 128  }
  0xee   :  { %659 = vsyncadd [#allocation4], 4294967168 }
  0xef   :  { %660 = dma.done.wait [#allocation13], 128  }
  0xf0   :  { %661 = vsyncadd [#allocation13], 4294967168 }
  0xf1   :  { %447 = vsyncpa [#allocation3], 1 }
  0xf2   :  { %448 = vsyncpa [#allocation6], 1 }
  0xf3   :  { %449 = vsyncpa [#allocation9], 1 }
  0xf4   :  { %450 = vsyncpa [#allocation4], 1 }
  0xf5   :  { %451 = vsyncpa [#allocation13], 1 }

</bundles_post_ra>
